<compile_context>
chip_gen: v7x
topology: tpu7x:2x2x1
jax: 0.10.0
libtpu: 0.0.40
codegen_flags: <defaults>
</compile_context>

<pallas_src>
import jax
import jax.numpy as jnp
from jax.experimental import pallas as pl
from jax.experimental.pallas import tpu as pltpu


def _round_up(x, m):
    return ((x + m - 1) // m) * m


def _make_kernel(q_tot, tm, qh_use):
    def kernel(main_ref, halo_ref, w_ref, b_ref, o_ref, win_ref):
        # main_ref: (CS, TM)        bf16  -- window body (coarse-time on lanes)
        # halo_ref: (CS, qh_use)    bf16  -- extra coarse columns for the shifts
        # w_ref:    (q_tot, C_out_g, CS) bf16
        # b_ref:    (C_out_g, 1)    f32
        # o_ref:    (C_out_g, TM)   out dtype (time on lanes, lane-dense)
        # win_ref:  (CS, TM+qh_use) bf16 scratch (main ++ halo)
        win_ref[:, :tm] = main_ref[...]
        win_ref[:, tm:tm + qh_use] = halo_ref[...]
        acc = jnp.zeros(o_ref.shape, jnp.float32)
        for q in range(q_tot):                      # small static unroll
            x_q = win_ref[:, q:q + tm]              # (CS, TM) shifted slice
            acc = acc + jnp.dot(w_ref[q], x_q,
                                preferred_element_type=jnp.float32)
        o_ref[...] = (acc + b_ref[...]).astype(o_ref.dtype)

    return kernel


def my_conv1d_pad_same(x, weight, bias, *, stride, groups=1):
    """Forward of MyConv1dPadSame.

    x:      (B, C_in, L)
    weight: (C_out, C_in // groups, K)   (PyTorch Conv1d layout)
    bias:   (C_out,)
    returns (B, C_out, L_out), L_out = ceil(L / stride)
    """
    B, C_in, L = x.shape
    C_out, C_in_g, K = weight.shape
    G = groups
    assert C_in % G == 0 and C_out % G == 0 and C_in_g == C_in // G
    C_out_g = C_out // G
    out_dtype = x.dtype

    # --- SAME padding, exactly as in the PyTorch module ---------------------
    L_out = (L + stride - 1) // stride
    p = max(0, (L_out - 1) * stride + K - L)
    pad_left = p // 2

    Q_tot = (K + stride - 1) // stride       # matmuls per tile
    Q_h = Q_tot - 1                          # halo width (coarse columns)
    Qh_use = max(Q_h, 1)
    CS = C_in_g * stride                     # contraction dim per matmul

    # --- output-time tile: multiple of 128 lanes, sized for DMA efficiency ---
    TM_cap = max(512, min(4096, _round_up((512 * 1024) // max(2 * CS, 1), 128)))
    TM = min(_round_up(L_out, 128), TM_cap)

    def _foot(tm):  # rough double-buffered VMEM footprint in bytes
        return (2 * CS * tm * 2 + 2 * CS * Qh_use * 2
                + 2 * C_out_g * tm * jnp.dtype(out_dtype).itemsize
                + CS * (tm + Qh_use) * 2
                + Q_tot * C_out_g * CS * 2 + C_out_g * 4)

    while TM > 128 and _foot(TM) > 24 * 1024 * 1024:   # keep v7x (64 MiB/TC) safe
        TM -= 128

    n_t = -(-L_out // TM)
    L_c = n_t * TM + Q_h                    # coarse columns materialised
    Lp2 = L_c * stride                      # >= module's SAME-padded length

    # --- XLA prologue (O(input) bytes): cast -> pad -> phase de-interleave ---
    xb = x.astype(jnp.bfloat16)
    x_pp = jnp.pad(xb, ((0, 0), (0, 0), (pad_left, Lp2 - L - pad_left)))
    # (B, C_in, Lp2) -> (B, G, C_in_g*stride, L_c); channel index = c*stride + r,
    # coarse column u holds padded time position u*stride + r.
    # For stride == 1 this is a pure (free) reshape.
    x_cd = (x_pp.reshape(B, C_in, L_c, stride)
            .transpose(0, 1, 3, 2)
            .reshape(B, G, CS, L_c))

    # Halo: the Q_h coarse columns following each TM-wide main block (tiny).
    if Q_h > 0:
        u_idx = (jnp.arange(n_t)[:, None] + 1) * TM + jnp.arange(Q_h)[None, :]
        halo = x_cd[:, :, :, u_idx]                     # (B, G, CS, n_t, Q_h)
        halo = jnp.transpose(halo, (0, 1, 3, 2, 4))     # (B, G, n_t, CS, Q_h)
    else:
        halo = jnp.zeros((B, G, n_t, CS, 1), jnp.bfloat16)

    # Weights: (C_out, C_in_g, K) -> (G, Q_tot, C_out_g, CS), k = q*stride + r
    # (zero-padded taps for k >= K).
    w_p = jnp.pad(weight, ((0, 0), (0, 0), (0, Q_tot * stride - K)))
    w_q = (w_p.astype(jnp.bfloat16)
           .reshape(G, C_out_g, C_in_g, Q_tot, stride)
           .transpose(0, 3, 1, 2, 4)
           .reshape(G, Q_tot, C_out_g, CS))
    b_r = bias.astype(jnp.float32).reshape(G, C_out_g, 1)

    L_out_pad = n_t * TM
    kernel = _make_kernel(Q_tot, TM, Qh_use)

    cost = pl.CostEstimate(
        flops=int(2 * G * B * L_out_pad * C_out_g * CS * Q_tot),
        transcendentals=0,
        bytes_accessed=int((x_cd.size + halo.size + w_q.size) * 2 + b_r.size * 4
                           + B * C_out * L_out_pad
                           * jnp.dtype(out_dtype).itemsize),
    )

    out = pl.pallas_call(
        kernel,
        out_shape=jax.ShapeDtypeStruct((B, G, C_out_g, L_out_pad), out_dtype),
        grid=(G, B, n_t),
        in_specs=[
            # main window body: (CS, TM) slab of x_cd, time tiles along lanes
            pl.BlockSpec((None, None, CS, TM), lambda g, b, m: (b, g, 0, m)),
            # halo columns for this tile
            pl.BlockSpec((None, None, None, CS, Qh_use),
                         lambda g, b, m: (b, g, m, 0, 0)),
            # per-group weights / bias: block index constant over (b, m) axes
            pl.BlockSpec((None, Q_tot, C_out_g, CS), lambda g, b, m: (g, 0, 0, 0)),
            pl.BlockSpec((None, C_out_g, 1), lambda g, b, m: (g, 0, 0)),
        ],
        out_specs=pl.BlockSpec((None, None, C_out_g, TM),
                               lambda g, b, m: (b, g, 0, m)),
        scratch_shapes=[pltpu.VMEM((CS, TM + Qh_use), jnp.bfloat16)],
        compiler_params=pltpu.CompilerParams(
            dimension_semantics=("parallel", "parallel", "parallel"),
            vmem_limit_bytes=int(min(64 * 1024 * 1024,
                                     max(16 * 1024 * 1024, 4 * _foot(TM)))),
        ),
        cost_estimate=cost,
    )(x_cd, halo, w_q, b_r)

    # (B, G, C_out_g, L_out_pad) -> (B, C_out, L_out); a pure reshape when
    # L_out is tile-aligned, otherwise a small output-sized slice.
    return out[:, :, :, :L_out].reshape(B, C_out, L_out)


def _reference(x, weight, bias, *, stride, groups):
    """Pure-JAX reference mirroring the PyTorch forward exactly."""
    L = x.shape[-1]
    K = weight.shape[-1]
    out_dim = (L + stride - 1) // stride
    p = max(0, (out_dim - 1) * stride + K - L)
    pad_left = p // 2
    pad_right = p - pad_left
    y = jax.lax.conv_general_dilated(
        x, weight,
        window_strides=(stride,),
        padding=[(pad_left, pad_right)],
        dimension_numbers=("NCH", "OIH", "NCH"),
        feature_group_count=groups,
        precision=jax.lax.Precision.HIGHEST,
    )
    return y + bias[None, :, None]


if __name__ == "__main__":
    conv = jax.jit(my_conv1d_pad_same, static_argnames=("stride", "groups"))

    key = jax.random.PRNGKey(0)
    k1, k2, k3, k4, k5, k6 = jax.random.split(key, 6)

    # Config 1: stride=1, groups=1 (module defaults).
    B, C_in, C_out, L, K, stride, groups = 2, 4, 8, 16, 3, 1, 1
    x = jax.random.normal(k1, (B, C_in, L), dtype=jnp.float32)
    w = jax.random.normal(k2, (C_out, C_in // groups, K), dtype=jnp.float32) * 0.3
    b = jax.random.normal(k3, (C_out,), dtype=jnp.float32) * 0.1
    out = jax.block_until_ready(conv(x, w, b, stride=stride, groups=groups))
    ref = _reference(x, w, b, stride=stride, groups=groups)
    assert out.shape == ref.shape, (out.shape, ref.shape)
    assert jnp.allclose(out, ref, rtol=2e-2, atol=2e-2), float(
        jnp.max(jnp.abs(out - ref)))

    # Config 2: stride=2, groups=2 (strided SAME padding + grouped conv).
    B, C_in, C_out, L, K, stride, groups = 2, 4, 8, 16, 5, 2, 2
    x = jax.random.normal(k4, (B, C_in, L), dtype=jnp.float32)
    w = jax.random.normal(k5, (C_out, C_in // groups, K), dtype=jnp.float32) * 0.3
    b = jax.random.normal(k6, (C_out,), dtype=jnp.float32) * 0.1
    out = jax.block_until_ready(conv(x, w, b, stride=stride, groups=groups))
    ref = _reference(x, w, b, stride=stride, groups=groups)
    assert out.shape == ref.shape, (out.shape, ref.shape)
    assert jnp.allclose(out, ref, rtol=2e-2, atol=2e-2), float(
        jnp.max(jnp.abs(out - ref)))

    print("KERNEL_OK")
</pallas_src>

<mosaic_0001>
module attributes {stable_mosaic.version = 11 : i64} {
  func.func @kernel(%arg0: i32, %arg1: i32, %arg2: i32, %arg3: memref<1x1x4x128xbf16, #tpu.memory_space<vmem>>, %arg4: memref<1x1x1x4x2xbf16, #tpu.memory_space<vmem>>, %arg5: memref<1x3x8x4xbf16, #tpu.memory_space<vmem>>, %arg6: memref<1x8x1xf32, #tpu.memory_space<vmem>>, %arg7: memref<1x1x8x128xf32, #tpu.memory_space<vmem>>, %arg8: memref<4x130xbf16, #tpu.memory_space<vmem>>) attributes {dimension_semantics = [#tpu.dimension_semantics<parallel>, #tpu.dimension_semantics<parallel>, #tpu.dimension_semantics<parallel>], iteration_bounds = array<i64: 1, 2, 1>, scalar_prefetch = 0 : i64, scratch_operands = 1 : i64, tpu.core_type = #tpu.core_type<tc>, window_params = [{transform_indices = @transform_0, window_bounds = array<i64: 1, 1, 4, 128>}, {transform_indices = @transform_1, window_bounds = array<i64: 1, 1, 1, 4, 2>}, {transform_indices = @transform_2, window_bounds = array<i64: 1, 3, 8, 4>}, {transform_indices = @transform_3, window_bounds = array<i64: 1, 8, 1>}, {transform_indices = @transform_4, window_bounds = array<i64: 1, 1, 8, 128>}]} {
    %c0 = arith.constant 0 : index
    %c0_0 = arith.constant 0 : index
    %c0_1 = arith.constant 0 : index
    %c0_2 = arith.constant 0 : index
    %0 = vector.load %arg3[%c0, %c0_0, %c0_1, %c0_2] : memref<1x1x4x128xbf16, #tpu.memory_space<vmem>>, vector<1x1x4x128xbf16>
    %1 = vector.shape_cast %0 : vector<1x1x4x128xbf16> to vector<4x128xbf16>
    %c0_3 = arith.constant 0 : index
    %c0_4 = arith.constant 0 : index
    %2 = vector.load %arg8[%c0_3, %c0_4] : memref<4x130xbf16, #tpu.memory_space<vmem>>, vector<4x128xbf16>
    tpu.vector_store %arg8[%c0_3, %c0_4], %1 {strides = array<i32>} : memref<4x130xbf16, #tpu.memory_space<vmem>>, vector<4x128xbf16>,
    %c0_5 = arith.constant 0 : index
    %c0_6 = arith.constant 0 : index
    %c0_7 = arith.constant 0 : index
    %c0_8 = arith.constant 0 : index
    %c0_9 = arith.constant 0 : index
    %3 = vector.load %arg4[%c0_5, %c0_6, %c0_7, %c0_8, %c0_9] : memref<1x1x1x4x2xbf16, #tpu.memory_space<vmem>>, vector<1x1x1x4x2xbf16>
    %4 = vector.shape_cast %3 : vector<1x1x1x4x2xbf16> to vector<4x2xbf16>
    %c0_10 = arith.constant 0 : index
    %c128 = arith.constant 128 : index
    %5 = vector.load %arg8[%c0_10, %c128] : memref<4x130xbf16, #tpu.memory_space<vmem>>, vector<4x2xbf16>
    tpu.vector_store %arg8[%c0_10, %c128], %4 {strides = array<i32>} : memref<4x130xbf16, #tpu.memory_space<vmem>>, vector<4x2xbf16>,
    %cst = arith.constant 0.000000e+00 : f32
    %6 = vector.broadcast %cst : f32 to vector<8x128xf32>
    %c0_11 = arith.constant 0 : index
    %c0_12 = arith.constant 0 : index
    %7 = vector.load %arg8[%c0_11, %c0_12] : memref<4x130xbf16, #tpu.memory_space<vmem>>, vector<4x128xbf16>
    %c0_13 = arith.constant 0 : index
    %c0_14 = arith.constant 0 : index
    %c0_15 = arith.constant 0 : index
    %c0_16 = arith.constant 0 : index
    %8 = vector.load %arg5[%c0_13, %c0_14, %c0_15, %c0_16] : memref<1x3x8x4xbf16, #tpu.memory_space<vmem>>, vector<1x1x8x4xbf16>
    %9 = vector.shape_cast %8 : vector<1x1x8x4xbf16> to vector<8x4xbf16>
    %cst_17 = arith.constant dense<0.000000e+00> : vector<8x128xf32>
    %10 = tpu.matmul %9, %7, %cst_17 {dimension_numbers = #tpu.dot_dimension_numbers<[1], [0], [0], [1], [0, 0, 1, 1], [], []>} : vector<8x4xbf16>, vector<4x128xbf16>, vector<8x128xf32> -> vector<8x128xf32>
    %11 = arith.addf %6, %10 : vector<8x128xf32>
    %c0_18 = arith.constant 0 : index
    %c1 = arith.constant 1 : index
    %12 = vector.load %arg8[%c0_18, %c1] : memref<4x130xbf16, #tpu.memory_space<vmem>>, vector<4x128xbf16>
    %c0_19 = arith.constant 0 : index
    %c1_20 = arith.constant 1 : index
    %c0_21 = arith.constant 0 : index
    %c0_22 = arith.constant 0 : index
    %13 = vector.load %arg5[%c0_19, %c1_20, %c0_21, %c0_22] : memref<1x3x8x4xbf16, #tpu.memory_space<vmem>>, vector<1x1x8x4xbf16>
    %14 = vector.shape_cast %13 : vector<1x1x8x4xbf16> to vector<8x4xbf16>
    %cst_23 = arith.constant dense<0.000000e+00> : vector<8x128xf32>
    %15 = tpu.matmul %14, %12, %cst_23 {dimension_numbers = #tpu.dot_dimension_numbers<[1], [0], [0], [1], [0, 0, 1, 1], [], []>} : vector<8x4xbf16>, vector<4x128xbf16>, vector<8x128xf32> -> vector<8x128xf32>
    %16 = arith.addf %11, %15 : vector<8x128xf32>
    %c0_24 = arith.constant 0 : index
    %c2 = arith.constant 2 : index
    %17 = vector.load %arg8[%c0_24, %c2] : memref<4x130xbf16, #tpu.memory_space<vmem>>, vector<4x128xbf16>
    %c0_25 = arith.constant 0 : index
    %c2_26 = arith.constant 2 : index
    %c0_27 = arith.constant 0 : index
    %c0_28 = arith.constant 0 : index
    %18 = vector.load %arg5[%c0_25, %c2_26, %c0_27, %c0_28] : memref<1x3x8x4xbf16, #tpu.memory_space<vmem>>, vector<1x1x8x4xbf16>
    %19 = vector.shape_cast %18 : vector<1x1x8x4xbf16> to vector<8x4xbf16>
    %cst_29 = arith.constant dense<0.000000e+00> : vector<8x128xf32>
    %20 = tpu.matmul %19, %17, %cst_29 {dimension_numbers = #tpu.dot_dimension_numbers<[1], [0], [0], [1], [0, 0, 1, 1], [], []>} : vector<8x4xbf16>, vector<4x128xbf16>, vector<8x128xf32> -> vector<8x128xf32>
    %21 = arith.addf %16, %20 : vector<8x128xf32>
    %c0_30 = arith.constant 0 : index
    %c0_31 = arith.constant 0 : index
    %c0_32 = arith.constant 0 : index
    %22 = vector.load %arg6[%c0_30, %c0_31, %c0_32] : memref<1x8x1xf32, #tpu.memory_space<vmem>>, vector<1x8x1xf32>
    %23 = vector.shape_cast %22 : vector<1x8x1xf32> to vector<8x1xf32>
    %24 = vector.broadcast %23 : vector<8x1xf32> to vector<8x128xf32>
    %25 = arith.addf %21, %24 : vector<8x128xf32>
    %c0_33 = arith.constant 0 : index
    %c0_34 = arith.constant 0 : index
    %c0_35 = arith.constant 0 : index
    %c0_36 = arith.constant 0 : index
    %26 = vector.load %arg7[%c0_33, %c0_34, %c0_35, %c0_36] : memref<1x1x8x128xf32, #tpu.memory_space<vmem>>, vector<1x1x8x128xf32>
    %27 = vector.shape_cast %26 : vector<1x1x8x128xf32> to vector<8x128xf32>
    %28 = vector.shape_cast %25 : vector<8x128xf32> to vector<1x1x8x128xf32>
    tpu.vector_store %arg7[%c0_33, %c0_34, %c0_35, %c0_36], %28 {strides = array<i32>} : memref<1x1x8x128xf32, #tpu.memory_space<vmem>>, vector<1x1x8x128xf32>,
    return
  }
  func.func @transform_0(%arg0: i32, %arg1: i32, %arg2: i32) -> (i32, i32, i32, i32) {
    %c0_i32 = arith.constant 0 : i32
    %c0_i32_0 = arith.constant 0 : i32
    return %arg1, %arg0, %c0_i32, %arg2 : i32, i32, i32, i32
  }
  func.func @transform_1(%arg0: i32, %arg1: i32, %arg2: i32) -> (i32, i32, i32, i32, i32) {
    %c0_i32 = arith.constant 0 : i32
    %c0_i32_0 = arith.constant 0 : i32
    %c0_i32_1 = arith.constant 0 : i32
    return %arg1, %arg0, %arg2, %c0_i32, %c0_i32_0 : i32, i32, i32, i32, i32
  }
  func.func @transform_2(%arg0: i32, %arg1: i32, %arg2: i32) -> (i32, i32, i32, i32) {
    %c0_i32 = arith.constant 0 : i32
    %c0_i32_0 = arith.constant 0 : i32
    %c0_i32_1 = arith.constant 0 : i32
    %c0_i32_2 = arith.constant 0 : i32
    return %arg0, %c0_i32, %c0_i32_0, %c0_i32_1 : i32, i32, i32, i32
  }
  func.func @transform_3(%arg0: i32, %arg1: i32, %arg2: i32) -> (i32, i32, i32) {
    %c0_i32 = arith.constant 0 : i32
    %c0_i32_0 = arith.constant 0 : i32
    %c0_i32_1 = arith.constant 0 : i32
    return %arg0, %c0_i32, %c0_i32_0 : i32, i32, i32
  }
  func.func @transform_4(%arg0: i32, %arg1: i32, %arg2: i32) -> (i32, i32, i32, i32) {
    %c0_i32 = arith.constant 0 : i32
    %c0_i32_0 = arith.constant 0 : i32
    return %arg1, %arg0, %c0_i32, %arg2 : i32, i32, i32, i32
  }
}

</mosaic_0001>

<bundles_post_ra>
// kernel: my_conv1d_pad_same.1
= control target key start
LH: loop header
LB: loop body
LE: loop exit
PB: predicated region body
PF: predicated region fallthrough
CT: control target
= control target key end

     0   :  { %s799_s15 = smov 0   ;;  %s801_s16 = smov 0   ;;  %s861_s0 = inlined_call_operand.vmem [shape: bf16[2,1,4,130], index: 0, kind: input, shape index: {}]   ;;  %s862_s1 = inlined_call_operand.vmem [shape: bf16[2,1,1,4,2], index: 1, kind: input, shape index: {}]   ;;  %s863_s2 = inlined_call_operand.vmem [shape: bf16[1,3,8,4], index: 2, kind: input, shape index: {}]   ;;  %s864_s3 = inlined_call_operand.vmem [shape: f32[1,8,1], index: 3, kind: input, shape index: {}]   ;;  %s865_s4 = inlined_call_operand.vmem [shape: f32[2,1,8,128], index: 4, kind: output, shape index: {}]  }
   0x1   :  { %s803_s17 = smov 0  }
   0x2 LB: > { %s29_s18 = sadd.s32 1, %s763_s16  ;;  %p676_p0 = scmp.ge.s32.totalorder %s767_s17, 1  ;;  %s767_s17 = sphi %s803_s17, %s14_s17   ;;  %s763_s16 = sphi %s801_s16, %s867_s16   ;;  %s759_s15 = sphi %s799_s15, %s866_s15  }
   0x3   : > { %p31_p1 = scmp.ge.s32.totalorder %s29_s18, 2  ;;  %p234_p2 = scmp.lt.s32.totalorder %s767_s17, 3 }
   0x5   : > { %s869_s18 = smov (%p31_p1, %s29_s18), 0  ;;  %p235_p3 = pnand %p676_p0, %p234_p2 }
   0x6   : > { %p291_p4 = scmp.lt.s32.totalorder (!%p235_p3), %s759_s15, 1  ;;  %vm336_vm0 = vcmask (!%p235_p3), 9216   ;;  %v769_v2 = vmov (!%p235_p3), 0.0   ;;  %vm770_vm1 = vmmov (!%p235_p3), 0   ;;  %vm362_vm2 = vcmask (!%p235_p3), 1041408   ;;  %s771_s27 = smov (!%p235_p3), 126  }
   0x7   : > { %238 = sbr.rel (%p235_p3) target bundleno = 376 (0x178), region = 36  ;;  %697 = vmatprep.subr.bf16.mxu0 (!%p235_p3), %v769_v2  ;;  %703 = vmatprep.subr.bf16.mxu1 (!%p235_p3), %v769_v2  ;;  %s772_s28 = smov (!%p235_p3), 127   ;;  %vm358_vm3 = vcmask (!%p235_p3), 31744   ;;  %v339_v7 = vld [vmem:[%s863_s2] sm:$0xf] (!%p235_p3)  ;;  %v773_v8 = vmov (!%p235_p3), 0  }
   0x8   : > { %699 = vmatprep.mubr.msk.bf16.mxu0 (!%p235_p3), %vm770_vm1, %v769_v2  ;;  %705 = vmatprep.mubr.msk.bf16.mxu1 (!%p235_p3), %vm770_vm1, %v769_v2  ;;  %v517_v9 = vld [vmem:[%s864_s3] sm:$0xff] (!%p235_p3)  ;;  %vm468_vm4 = vcmask (!%p235_p3), 1031168   ;;  %vm356_vm5 = vcmask (!%p235_p3), 1039360   ;;  %v685_v19 = vld [vmem:[%s863_s2 + $0x8] sm:$0xf] (!%p235_p3) }
   0x9   : > { %744 = vset.pattern.permute.xlu0 (!%p235_p3), %v773_v8  ;;  %v681_v17 = vld [vmem:[%s863_s2 + $0x4] sm:$0xf] (!%p235_p3) }
   0xe   : > { %s871_s15 = smov (!%p291_p4, %s759_s15), 1 }
   0xf   : > { %s690_s19 = sshll.u32 %s871_s15, 2  ;;  %s679_s20 = sshll.u32 %s871_s15, 1 }
  0x10   : > { %s302_s23 = scalar_lea.vmem %s861_s0, %s690_s19  ;;  %s312_s26 = scalar_lea.vmem %s862_s1, %s679_s20 }
  0x11   : > { %v333_v0 = vld [vmem:[%s302_s23] sm:$0x3]  ;;  %s680_s11 = sshll.u32 %s871_s15, 3 }
  0x12   : > { %v335_v1 = vld [vmem:[%s312_s26] sm:$0x3]  ;;  %334 = vst [vmem:[#allocation2] sm:$0x3] %v333_v0  ;;  %s331_s14 = scalar_lea.vmem %s865_s4, %s680_s11 }
  0x13   : > { %337 = vst.msk [vmem:[#allocation2 + $0x2] sm:$0x3] %vm336_vm0, %v335_v1 }
  0x19   : > { %v338_v4 = vld [vmem:[#allocation2] sm:$0x3] }
  0x1a   : > { %v686_v3 = vld.sshfl [vmem:[#allocation2] sm:$0x33 pattern:$0x76325410]  ;;  %v410_v6 = vsel %vm362_vm2, %v338_v4, 0 }
  0x1b   : > { %464 = vrot.lane.b32.xlu1 %v686_v3, %s771_s27  ;;  %v463_v5 = vcombine.high %v686_v3, %v686_v3  ;;  %352 = vrot.lane.b32.xlu0 %v686_v3, %s772_s28 }
  0x1c   : > { %704 = vmatpush3.bf16.msra.mxu1 %v410_v6 }
  0x1f   : > { %466 = vrot.lane.b32.xlu1 %v463_v5, %s771_s27  ;;  %354 = vrot.lane.b32.xlu0 %v463_v5, %s772_s28 }
  0x20   : > { %706 = vmatmul.mubr.msk.bf16.vlgmr.msra.gmra.mrb[0].mxu1 %vm358_vm3, %v339_v7 }
  0x23   : > { %520 = vperm.xlu0 %744, %v517_v9  }
  0x8d   : > { %v465_v10 = vpop.permute.xlu1 %464  ;;  %v353_v11 = vpop.permute.xlu0 %352 }
  0x91   : > { %v467_v12 = vpop.permute.xlu1 %466  ;;  %v355_v13 = vpop.permute.xlu0 %354 }
  0x92   : > { %v469_v14 = vsel %vm468_vm4, %v465_v10, %v467_v12  ;;  %v357_v15 = vsel %vm356_vm5, %v353_v11, %v355_v13 }
  0x93   : > { %v364_v16 = vsel %vm362_vm2, %v357_v15, 0  ;;  %v474_v18 = vsel %vm362_vm2, %v469_v14, 0 }
  0x94   : > { %698 = vmatpush3.bf16.msra.mxu0 %v364_v16 }
  0x95   : > { %709 = vmatprep.subr.bf16.mxu0 %v769_v2 }
  0x97   : > { %700 = vmatmul.mubr.msk.bf16.vlgmr.msra.gmra.mrb[0].mxu0 %vm358_vm3, %v681_v17 }
  0x98   : > { %710 = vmatpush3.bf16.msra.mxu0 %v474_v18  ;;  %711 = vmatprep.mubr.msk.bf16.mxu0 %vm770_vm1, %v769_v2 }
  0x9f   : > { %712 = vmatmul.mubr.msk.bf16.vlgmr.msra.gmra.mrb[4].mxu0 %vm358_vm3, %v685_v19 }
  0xa2   : > { %v521_v30 = vpop.permute.xlu0 %520 }
  0xf3   : > { %v446_v20 = vpop.f32.mrb[0].mxu1 }
  0xf4   : > { %v707_v21 = vpop.f32.mrb[1].mxu1 }
  0xf5   : > { %v449_v22 = vpop.f32.mrb[2].mxu1 }
  0xf6   : > { %v708_v23 = vpop.f32.mrb[3].mxu1 }
 0x16a   : > { %v400_v24 = vpop.f32.mrb[0].mxu0 }
 0x16b   : > { %v701_v25 = vpop.f32.mrb[1].mxu0  ;;  %v447_v26 = vadd.f32 %v446_v20, %v400_v24 }
 0x16c   : > { %v403_v27 = vpop.f32.mrb[2].mxu0 }
 0x16d   : > { %v702_v28 = vpop.f32.mrb[3].mxu0 }
 0x172   : > { %v510_v29 = vpop.f32.mrb[4].mxu0 }
 0x173   : > { %v516_v31 = vadd.f32 %v510_v29, %v447_v26  ;;  %v713_v32 = vpop.f32.mrb[5].mxu0 }
 0x174   : > { %v513_v33 = vpop.f32.mrb[6].mxu0 }
 0x175   : > { %v523_v34 = vadd.f32 %v521_v30, %v516_v31  ;;  %v714_v35 = vpop.f32.mrb[7].mxu0 }
 0x177   : > { %524 = vst [vmem:[%s331_s14] sm:$0xff] %v523_v34 }
 0x178 PF: > { %s14_s17 = sadd.s32 1, %s767_s17   ;;  %s866_s15 = smov %s763_s16 }
 0x179   : > { %p11_p5 = scmp.ge.s32.totalorder %s14_s17, 4   ;;  %s867_s16 = smov %s869_s18 }
 0x17b   :  { %13 = sbr.rel (!%p11_p5) target bundleno = 2 (0x2), region = 77 }

</bundles_post_ra>
